<compile_context>
chip_gen: v6e
topology: v6e:2x2x1
jax: 0.10.0
libtpu: 0.0.40
codegen_flags: <defaults>
</compile_context>

<pallas_src>
import functools

import numpy as np
import jax
import jax.numpy as jnp
from jax import lax
from jax.experimental import pallas as pl
from jax.experimental.pallas import tpu as pltpu


def _round_up(x: int, m: int) -> int:
    return ((x + m - 1) // m) * m


def _sublane_tile(dtype) -> int:
    """Native sublane tile for a dtype (8 for 4-byte, 16 for 2-byte)."""
    return 8 * (4 // jnp.dtype(dtype).itemsize)


def _temporal_block_kernel(x_ref, w1_ref, b1_ref, w2_ref, b2_ref, *rest,
                           K, d, Hs, L, fuse1, fuse2,
                           has_downsample, multi_tile, mask_tail):
    # x_ref : (1, Cin, TL)                    compute dtype (f32 or bf16)
    # w1_ref: (Cout, K*Cin)  if fuse1 else (K, Cout, Cin)
    # w2_ref: (Cout, K*Cout) if fuse2 else (K, Cout, Cout)
    # b*_ref: (Cout, 1)                       f32
    # wd_ref: (Cout, Cin), bd_ref: (Cout, 1)  only when has_downsample
    # out_ref: (1, Cout, TL)
    # xh_ref: (Cin, Hs), hh_ref: (Cout, Hs)   only when multi_tile (carry)
    i = 0
    if has_downsample:
        wd_ref, bd_ref = rest[i], rest[i + 1]
        i += 2
    out_ref = rest[i]
    i += 1
    if multi_tile:
        xh_ref, hh_ref = rest[i], rest[i + 1]

    j = pl.program_id(1)                         # time-tile index
    x_t = x_ref[0]                               # (Cin, TL)
    cdt = x_t.dtype
    Cin, TL = x_t.shape
    Cout = out_ref.shape[1]

    if multi_tile:
        @pl.when(j == 0)
        def _():                                 # causal zero history at t=0
            xh_ref[...] = jnp.zeros_like(xh_ref)
            hh_ref[...] = jnp.zeros_like(hh_ref)
        x_hist = xh_ref[...]
        h1_hist = hh_ref[...]
    else:
        x_hist = jnp.zeros((Cin, Hs), cdt)
        h1_hist = jnp.zeros((Cout, Hs), cdt)

    def causal_conv(hist, tile, w_ref, b_ref, fuse):
        # hist: (C, Hs), tile: (C, TL).  Returns (cat, f32 (Cout, TL) pre-act).
        cat = jnp.concatenate([hist, tile], axis=1)          # (C, Hs+TL)
        taps = []
        for k in range(K):
            s = (K - 1 - k) * d                              # causal look-back
            taps.append(tile if s == 0 else cat[:, Hs - s:Hs - s + TL])
        if fuse:
            # Single fused (Cout, K*C) x (K*C, TL) MXU dot.
            stack = jnp.concatenate(taps, axis=0)            # (K*C, TL)
            acc = jnp.dot(w_ref[...], stack,
                          preferred_element_type=jnp.float32)
        else:
            # K accumulating dots (no channel-concat copies; good on v7x MRB).
            acc = jnp.dot(w_ref[0], taps[0],
                          preferred_element_type=jnp.float32)
            for k in range(1, K):
                acc = acc + jnp.dot(w_ref[k], taps[k],
                                    preferred_element_type=jnp.float32)
        return cat, acc + b_ref[...]

    # ---- conv1 + bias + ReLU (dropout1 == identity) ----
    x_cat, z1 = causal_conv(x_hist, x_t, w1_ref, b1_ref, fuse1)
    h1 = jnp.maximum(z1, 0.0)                                # f32
    h1_c = h1.astype(cdt)
    # ---- conv2 + bias + ReLU (dropout2 == identity) ----
    h1_cat, z2 = causal_conv(h1_hist, h1_c, w2_ref, b2_ref, fuse2)
    h2 = jnp.maximum(z2, 0.0)                                # f32

    # ---- residual path ----
    if has_downsample:
        res = jnp.dot(wd_ref[...], x_t,
                      preferred_element_type=jnp.float32) + bd_ref[...]
    else:
        res = x_t.astype(jnp.float32)            # identity residual, no matmul

    y = jnp.maximum(h2 + res, 0.0)

    if mask_tail:
        # Zero columns >= L so the lane-padded output is chainable as-is.
        col = lax.broadcasted_iota(jnp.int32, (1, TL), 1) + j * TL
        y = jnp.where(col < L, y, 0.0)
    out_ref[0] = y.astype(out_ref.dtype)

    if multi_tile:
        # Carry the most recent Hs columns of x and h1 to the next time tile.
        xh_ref[...] = x_cat[:, TL:]
        hh_ref[...] = h1_cat[:, TL:]


def temporal_block(x, w1, b1, w2, b2, wd=None, bd=None, *,
                   kernel_size, dilation, padding,
                   compute_dtype=jnp.float32, out_dtype=jnp.float32,
                   time_tile=512, fuse_taps=None, trim_output=True):
    """TemporalBlock forward.

    x  : (B, Cin, L) float32
    w1 : (K, Cout, Cin),  b1: (Cout,)
    w2 : (K, Cout, Cout), b2: (Cout,)
    wd : (Cout, Cin) or None (identity residual), bd: (Cout,) or None
    compute_dtype : matmul-operand dtype (bf16 recommended on v6e/v7x).
    out_dtype     : output dtype (bf16 halves write traffic on v6e/v7x).
    time_tile     : target lane width per grid step (auto-shrunk to fit VMEM).
    trim_output   : True -> (B, Cout, L); False -> zero-tailed (B, Cout, Lpad)
                    (avoids the post-kernel HBM slice copy when stacking).
    """
    B, Cin, L = x.shape
    K, Cout = kernel_size, w1.shape[1]
    d = dilation
    # The chomp == causal-left-pad equivalence needs this (always true in TCNs).
    assert padding == (K - 1) * d, "TemporalBlock requires padding == (K-1)*dilation"
    has_downsample = wd is not None

    cdt = jnp.dtype(compute_dtype)
    odt = jnp.dtype(out_dtype)
    cb, ob = cdt.itemsize, odt.itemsize

    # Causal history width carried across time tiles (lane-aligned).
    Hs = max(_round_up((K - 1) * d, 128), 128)

    # Fuse the K shifted matmuls into one (Cout, K*C) x (K*C, TL) dot only when
    # the channel count is aligned to the dtype's sublane tile (aligned
    # in-kernel channel concat).  Override with fuse_taps (False on v7x).
    tile = _sublane_tile(cdt)
    fuse1 = (Cin % tile == 0) if fuse_taps is None else (fuse_taps and Cin % tile == 0)
    fuse2 = (Cout % tile == 0) if fuse_taps is None else (fuse_taps and Cout % tile == 0)

    def est_vmem(TL):
        # Rough per-step VMEM footprint (double-buffered I/O + live temporaries).
        e = 2 * Cin * TL * cb                      # x tile (double-buffered)
        e += 2 * Cout * TL * ob                    # out tile (double-buffered)
        e += (Cin + Cout) * Hs * cb                # history scratch
        e += (Cin + Cout) * (Hs + TL) * cb         # concat buffers
        e += K * (Cin + Cout) * TL * cb            # shifted tap slices
        e += 4 * Cout * TL * 4                     # f32 temporaries (h1,h2,res,y)
        w_elems = K * Cout * Cin + K * Cout * Cout
        if has_downsample:
            w_elems += Cout * Cin
        e += 2 * (w_elems * cb + 3 * Cout * 4)     # weights + biases (dbl-buf)
        return e

    budget = 40 * 1024 * 1024                      # fits v7x 64 MiB VMEM w/ headroom
    tl_target = max(_round_up(time_tile, 128), 128)
    Lpad = max(_round_up(L, 128), 128)             # lane-dense time axis
    nblk = Lpad // 128
    TL = 128
    for g in range(1, min(nblk, tl_target // 128) + 1):
        cand = g * 128
        if nblk % g == 0 and est_vmem(cand) <= budget:
            TL = cand
    NT = Lpad // TL
    multi_tile = NT > 1
    mask_tail = L < Lpad

    x_p = jnp.pad(x, ((0, 0), (0, 0), (0, Lpad - L))).astype(cdt)

    def pack_w(w, fuse):
        w = w.astype(cdt)                          # (K, Cout, C)
        if fuse:
            return jnp.transpose(w, (1, 0, 2)).reshape(Cout, K * w.shape[2])
        return w

    w1k = pack_w(w1, fuse1)
    w2k = pack_w(w2, fuse2)
    b1c = b1.reshape(Cout, 1).astype(jnp.float32)
    b2c = b2.reshape(Cout, 1).astype(jnp.float32)

    def const_spec(arr):
        return pl.BlockSpec(arr.shape, lambda b, j, _nd=arr.ndim: (0,) * _nd)

    in_arrays = [x_p, w1k, b1c, w2k, b2c]
    in_specs = [
        pl.BlockSpec((1, Cin, TL), lambda b, j: (b, 0, j)),
        const_spec(w1k), const_spec(b1c), const_spec(w2k), const_spec(b2c),
    ]
    if has_downsample:
        wdk = wd.astype(cdt)
        bdc = bd.reshape(Cout, 1).astype(jnp.float32)
        in_arrays += [wdk, bdc]
        in_specs += [const_spec(wdk), const_spec(bdc)]

    scratch_shapes = []
    if multi_tile:
        scratch_shapes = [pltpu.VMEM((Cin, Hs), cdt),    # x history carry
                          pltpu.VMEM((Cout, Hs), cdt)]   # h1 history carry

    kernel = functools.partial(
        _temporal_block_kernel, K=K, d=d, Hs=Hs, L=L,
        fuse1=fuse1, fuse2=fuse2, has_downsample=has_downsample,
        multi_tile=multi_tile, mask_tail=mask_tail)

    vmem_limit = int(min(max(2 * est_vmem(TL), 32 * 1024 * 1024),
                         48 * 1024 * 1024))

    out = pl.pallas_call(
        kernel,
        out_shape=jax.ShapeDtypeStruct((B, Cout, Lpad), odt),
        grid_spec=pltpu.PrefetchScalarGridSpec(
            num_scalar_prefetch=0,
            grid=(B, NT),                          # batch parallel, time sequential
            in_specs=in_specs,
            out_specs=pl.BlockSpec((1, Cout, TL), lambda b, j: (b, 0, j)),
            scratch_shapes=scratch_shapes,
        ),
        compiler_params=pltpu.CompilerParams(
            dimension_semantics=("parallel", "arbitrary"),
            vmem_limit_bytes=vmem_limit),
    )(*in_arrays)

    if trim_output:
        out = out[:, :, :L]
    return out


def reference_temporal_block(x, w1, b1, w2, b2, wd=None, bd=None, *,
                             kernel_size, dilation, padding):
    """Pure-JAX reference mirroring the PyTorch module (eval mode)."""
    def conv1d(inp, w, b, dil, pad):
        w_t = jnp.transpose(w, (1, 2, 0))          # (K,O,I) -> torch (O,I,K)
        out = lax.conv_general_dilated(
            inp, w_t, window_strides=(1,), padding=[(pad, pad)],
            rhs_dilation=(dil,), dimension_numbers=('NCH', 'OIH', 'NCH'))
        return out + b[None, :, None]

    p = padding
    h = conv1d(x, w1, b1, dilation, p)
    if p > 0:
        h = h[:, :, :-p]                           # chomp1
    h = jnp.maximum(h, 0.0)                        # relu1 (dropout1 = id)
    h = conv1d(h, w2, b2, dilation, p)
    if p > 0:
        h = h[:, :, :-p]                           # chomp2
    h = jnp.maximum(h, 0.0)                        # relu2 (dropout2 = id)
    if wd is not None:
        res = jnp.einsum('oi,bil->bol', wd, x) + bd[None, :, None]
    else:
        res = x
    return jnp.maximum(h + res, 0.0)


if __name__ == "__main__":
    def uinit(k, shape, fan_in):
        bound = 1.0 / np.sqrt(fan_in)
        return jax.random.uniform(k, shape, jnp.float32, -bound, bound)

    def run_case(key, n_inputs, n_outputs, kernel_size, dilation, B, L,
                 compute_dtype, out_dtype, tol, **kw):
        padding = (kernel_size - 1) * dilation
        ks = jax.random.split(key, 7)
        x = jax.random.normal(ks[0], (B, n_inputs, L), jnp.float32)
        w1 = uinit(ks[1], (kernel_size, n_outputs, n_inputs), n_inputs * kernel_size)
        b1 = uinit(ks[2], (n_outputs,), n_inputs * kernel_size)
        w2 = uinit(ks[3], (kernel_size, n_outputs, n_outputs), n_outputs * kernel_size)
        b2 = uinit(ks[4], (n_outputs,), n_outputs * kernel_size)
        if n_inputs != n_outputs:
            wd = uinit(ks[5], (n_outputs, n_inputs), n_inputs)
            bd = uinit(ks[6], (n_outputs,), n_inputs)
        else:
            wd = bd = None                         # identity residual path

        out = temporal_block(x, w1, b1, w2, b2, wd, bd,
                             kernel_size=kernel_size, dilation=dilation,
                             padding=padding, compute_dtype=compute_dtype,
                             out_dtype=out_dtype, **kw)
        out = jax.block_until_ready(out)

        ref = reference_temporal_block(x, w1, b1, w2, b2, wd, bd,
                                       kernel_size=kernel_size,
                                       dilation=dilation, padding=padding)
        assert out.shape == (B, n_outputs, L)
        np.testing.assert_allclose(np.asarray(out.astype(jnp.float32)),
                                   np.asarray(ref), rtol=tol, atol=tol)

    keys = jax.random.split(jax.random.PRNGKey(0), 4)

    # Tolerances: default TPU matmul precision rounds f32 operands to bf16, so
    # kernel-vs-XLA-conv agreement is at the few-1e-3 level; structural bugs
    # (wrong shift / missing ReLU / wrong residual) show up as O(1) errors.
    # 1) Downsample path (Cin != Cout), single time tile, f32.
    run_case(keys[0], 4, 8, 3, 2, 2, 16, jnp.float32, jnp.float32, 1e-2)
    # 2) Identity-residual path (Cin == Cout == 8), f32: exercises the fused
    #    (Cout, K*C) x (K*C, TL) single-dot conv and the static downsample skip.
    run_case(keys[1], 8, 8, 3, 2, 2, 16, jnp.float32, jnp.float32, 1e-2)
    # 3) bf16 matmul operands + bf16 output (v6e/v7x style), f32 accumulation.
    run_case(keys[2], 4, 8, 3, 2, 2, 16, jnp.bfloat16, jnp.bfloat16, 1e-1)
    # 4) Multi-tile time axis (time_tile=128 forces 3 tiles for L=300):
    #    exercises the causal history carry across time tiles.
    run_case(keys[3], 4, 8, 3, 4, 2, 300, jnp.float32, jnp.float32, 1e-2,
             time_tile=128)

    print("KERNEL_OK")
</pallas_src>

<mosaic_0001>
module attributes {stable_mosaic.version = 11 : i64} {
  func.func @_temporal_block_kernel(%arg0: i32, %arg1: i32, %arg2: memref<1x4x128xf32, #tpu.memory_space<vmem>>, %arg3: memref<3x8x4xf32, #tpu.memory_space<vmem>>, %arg4: memref<8x1xf32, #tpu.memory_space<vmem>>, %arg5: memref<8x24xf32, #tpu.memory_space<vmem>>, %arg6: memref<8x1xf32, #tpu.memory_space<vmem>>, %arg7: memref<8x4xf32, #tpu.memory_space<vmem>>, %arg8: memref<8x1xf32, #tpu.memory_space<vmem>>, %arg9: memref<1x8x128xf32, #tpu.memory_space<vmem>>) attributes {dimension_semantics = [#tpu.dimension_semantics<parallel>, #tpu.dimension_semantics<arbitrary>], iteration_bounds = array<i64: 2, 1>, scalar_prefetch = 0 : i64, scratch_operands = 0 : i64, tpu.core_type = #tpu.core_type<tc>, window_params = [{transform_indices = @transform_0, window_bounds = array<i64: 1, 4, 128>}, {pipeline_mode = #tpu.pipeline_mode<synchronous>, transform_indices = @transform_1, window_bounds = array<i64: 3, 8, 4>}, {pipeline_mode = #tpu.pipeline_mode<synchronous>, transform_indices = @transform_2, window_bounds = array<i64: 8, 1>}, {pipeline_mode = #tpu.pipeline_mode<synchronous>, transform_indices = @transform_3, window_bounds = array<i64: 8, 24>}, {pipeline_mode = #tpu.pipeline_mode<synchronous>, transform_indices = @transform_4, window_bounds = array<i64: 8, 1>}, {pipeline_mode = #tpu.pipeline_mode<synchronous>, transform_indices = @transform_5, window_bounds = array<i64: 8, 4>}, {pipeline_mode = #tpu.pipeline_mode<synchronous>, transform_indices = @transform_6, window_bounds = array<i64: 8, 1>}, {transform_indices = @transform_7, window_bounds = array<i64: 1, 8, 128>}]} {
    %c0 = arith.constant 0 : index
    %c0_0 = arith.constant 0 : index
    %c0_1 = arith.constant 0 : index
    %0 = vector.load %arg2[%c0, %c0_0, %c0_1] : memref<1x4x128xf32, #tpu.memory_space<vmem>>, vector<1x4x128xf32>
    %1 = vector.shape_cast %0 : vector<1x4x128xf32> to vector<4x128xf32>
    %cst = arith.constant 0.000000e+00 : f32
    %2 = vector.broadcast %cst : f32 to vector<4x128xf32>
    %cst_2 = arith.constant 0.000000e+00 : f32
    %3 = vector.broadcast %cst_2 : f32 to vector<8x128xf32>
    %4 = tpu.concatenate %2, %1 in 1 : vector<4x128xf32>, vector<4x128xf32> -> vector<4x256xf32>
    %5 = vector.extract_strided_slice %4 {offsets = [0, 124], sizes = [4, 128], strides = [1, 1]} : vector<4x256xf32> to vector<4x128xf32>
    %6 = vector.extract_strided_slice %4 {offsets = [0, 126], sizes = [4, 128], strides = [1, 1]} : vector<4x256xf32> to vector<4x128xf32>
    %c0_3 = arith.constant 0 : index
    %c0_4 = arith.constant 0 : index
    %c0_5 = arith.constant 0 : index
    %7 = vector.load %arg3[%c0_3, %c0_4, %c0_5] : memref<3x8x4xf32, #tpu.memory_space<vmem>>, vector<1x8x4xf32>
    %8 = vector.shape_cast %7 : vector<1x8x4xf32> to vector<8x4xf32>
    %cst_6 = arith.constant dense<0.000000e+00> : vector<8x128xf32>
    %9 = tpu.matmul %8, %5, %cst_6 {dimension_numbers = #tpu.dot_dimension_numbers<[1], [0], [0], [1], [0, 0, 1, 1], [], []>} : vector<8x4xf32>, vector<4x128xf32>, vector<8x128xf32> -> vector<8x128xf32>
    %c1 = arith.constant 1 : index
    %c0_7 = arith.constant 0 : index
    %c0_8 = arith.constant 0 : index
    %10 = vector.load %arg3[%c1, %c0_7, %c0_8] : memref<3x8x4xf32, #tpu.memory_space<vmem>>, vector<1x8x4xf32>
    %11 = vector.shape_cast %10 : vector<1x8x4xf32> to vector<8x4xf32>
    %cst_9 = arith.constant dense<0.000000e+00> : vector<8x128xf32>
    %12 = tpu.matmul %11, %6, %cst_9 {dimension_numbers = #tpu.dot_dimension_numbers<[1], [0], [0], [1], [0, 0, 1, 1], [], []>} : vector<8x4xf32>, vector<4x128xf32>, vector<8x128xf32> -> vector<8x128xf32>
    %13 = arith.addf %9, %12 : vector<8x128xf32>
    %c2 = arith.constant 2 : index
    %c0_10 = arith.constant 0 : index
    %c0_11 = arith.constant 0 : index
    %14 = vector.load %arg3[%c2, %c0_10, %c0_11] : memref<3x8x4xf32, #tpu.memory_space<vmem>>, vector<1x8x4xf32>
    %15 = vector.shape_cast %14 : vector<1x8x4xf32> to vector<8x4xf32>
    %cst_12 = arith.constant dense<0.000000e+00> : vector<8x128xf32>
    %16 = tpu.matmul %15, %1, %cst_12 {dimension_numbers = #tpu.dot_dimension_numbers<[1], [0], [0], [1], [0, 0, 1, 1], [], []>} : vector<8x4xf32>, vector<4x128xf32>, vector<8x128xf32> -> vector<8x128xf32>
    %17 = arith.addf %13, %16 : vector<8x128xf32>
    %c0_13 = arith.constant 0 : index
    %c0_14 = arith.constant 0 : index
    %18 = vector.load %arg4[%c0_13, %c0_14] : memref<8x1xf32, #tpu.memory_space<vmem>>, vector<8x1xf32>
    %19 = vector.broadcast %18 : vector<8x1xf32> to vector<8x128xf32>
    %20 = arith.addf %17, %19 : vector<8x128xf32>
    %cst_15 = arith.constant 0.000000e+00 : f32
    %21 = vector.broadcast %cst_15 : f32 to vector<8x128xf32>
    %22 = arith.maximumf %20, %21 : vector<8x128xf32>
    %23 = tpu.concatenate %3, %22 in 1 : vector<8x128xf32>, vector<8x128xf32> -> vector<8x256xf32>
    %24 = vector.extract_strided_slice %23 {offsets = [0, 124], sizes = [8, 128], strides = [1, 1]} : vector<8x256xf32> to vector<8x128xf32>
    %25 = vector.extract_strided_slice %23 {offsets = [0, 126], sizes = [8, 128], strides = [1, 1]} : vector<8x256xf32> to vector<8x128xf32>
    %26 = tpu.concatenate %24, %25, %22 in 0 : vector<8x128xf32>, vector<8x128xf32>, vector<8x128xf32> -> vector<24x128xf32>
    %c0_16 = arith.constant 0 : index
    %c0_17 = arith.constant 0 : index
    %27 = vector.load %arg5[%c0_16, %c0_17] : memref<8x24xf32, #tpu.memory_space<vmem>>, vector<8x24xf32>
    %cst_18 = arith.constant dense<0.000000e+00> : vector<8x128xf32>
    %28 = tpu.matmul %27, %26, %cst_18 {dimension_numbers = #tpu.dot_dimension_numbers<[1], [0], [0], [1], [0, 0, 1, 1], [], []>} : vector<8x24xf32>, vector<24x128xf32>, vector<8x128xf32> -> vector<8x128xf32>
    %c0_19 = arith.constant 0 : index
    %c0_20 = arith.constant 0 : index
    %29 = vector.load %arg6[%c0_19, %c0_20] : memref<8x1xf32, #tpu.memory_space<vmem>>, vector<8x1xf32>
    %30 = vector.broadcast %29 : vector<8x1xf32> to vector<8x128xf32>
    %31 = arith.addf %28, %30 : vector<8x128xf32>
    %cst_21 = arith.constant 0.000000e+00 : f32
    %32 = vector.broadcast %cst_21 : f32 to vector<8x128xf32>
    %33 = arith.maximumf %31, %32 : vector<8x128xf32>
    %c0_22 = arith.constant 0 : index
    %c0_23 = arith.constant 0 : index
    %34 = vector.load %arg7[%c0_22, %c0_23] : memref<8x4xf32, #tpu.memory_space<vmem>>, vector<8x4xf32>
    %cst_24 = arith.constant dense<0.000000e+00> : vector<8x128xf32>
    %35 = tpu.matmul %34, %1, %cst_24 {dimension_numbers = #tpu.dot_dimension_numbers<[1], [0], [0], [1], [0, 0, 1, 1], [], []>} : vector<8x4xf32>, vector<4x128xf32>, vector<8x128xf32> -> vector<8x128xf32>
    %c0_25 = arith.constant 0 : index
    %c0_26 = arith.constant 0 : index
    %36 = vector.load %arg8[%c0_25, %c0_26] : memref<8x1xf32, #tpu.memory_space<vmem>>, vector<8x1xf32>
    %37 = vector.broadcast %36 : vector<8x1xf32> to vector<8x128xf32>
    %38 = arith.addf %35, %37 : vector<8x128xf32>
    %39 = arith.addf %33, %38 : vector<8x128xf32>
    %cst_27 = arith.constant 0.000000e+00 : f32
    %40 = vector.broadcast %cst_27 : f32 to vector<8x128xf32>
    %41 = arith.maximumf %39, %40 : vector<8x128xf32>
    %42 = tpu.iota {dimensions = array<i32: 1>} : vector<1x128xi32>
    %c128_i32 = arith.constant 128 : i32
    %43 = arith.muli %arg1, %c128_i32 : i32
    %44 = vector.broadcast %43 : i32 to vector<1x128xi32>
    %45 = arith.addi %42, %44 : vector<1x128xi32>
    %c16_i32 = arith.constant 16 : i32
    %46 = vector.broadcast %c16_i32 : i32 to vector<1x128xi32>
    %47 = arith.cmpi slt, %45, %46 : vector<1x128xi32>
    %cst_28 = arith.constant 0.000000e+00 : f32
    %48 = vector.shape_cast %47 : vector<1x128xi1> to vector<1x128xi1>
    %49 = vector.broadcast %48 : vector<1x128xi1> to vector<8x128xi1>
    %50 = vector.broadcast %cst_28 : f32 to vector<8x128xf32>
    %51 = arith.select %49, %41, %50 : vector<8x128xi1>, vector<8x128xf32>
    %c0_29 = arith.constant 0 : index
    %c0_30 = arith.constant 0 : index
    %c0_31 = arith.constant 0 : index
    %52 = vector.load %arg9[%c0_29, %c0_30, %c0_31] : memref<1x8x128xf32, #tpu.memory_space<vmem>>, vector<1x8x128xf32>
    %53 = vector.shape_cast %52 : vector<1x8x128xf32> to vector<8x128xf32>
    %54 = vector.shape_cast %51 : vector<8x128xf32> to vector<1x8x128xf32>
    tpu.vector_store %arg9[%c0_29, %c0_30, %c0_31], %54 {strides = array<i32>} : memref<1x8x128xf32, #tpu.memory_space<vmem>>, vector<1x8x128xf32>,
    return
  }
  func.func @transform_0(%arg0: i32, %arg1: i32) -> (i32, i32, i32) {
    %c0_i32 = arith.constant 0 : i32
    %c0_i32_0 = arith.constant 0 : i32
    return %arg0, %c0_i32, %arg1 : i32, i32, i32
  }
  func.func @transform_1(%arg0: i32, %arg1: i32) -> (i32, i32, i32) {
    %c0_i32 = arith.constant 0 : i32
    %c0_i32_0 = arith.constant 0 : i32
    %c0_i32_1 = arith.constant 0 : i32
    %c0_i32_2 = arith.constant 0 : i32
    return %c0_i32, %c0_i32_0, %c0_i32_1 : i32, i32, i32
  }
  func.func @transform_2(%arg0: i32, %arg1: i32) -> (i32, i32) {
    %c0_i32 = arith.constant 0 : i32
    %c0_i32_0 = arith.constant 0 : i32
    %c0_i32_1 = arith.constant 0 : i32
    return %c0_i32, %c0_i32_0 : i32, i32
  }
  func.func @transform_3(%arg0: i32, %arg1: i32) -> (i32, i32) {
    %c0_i32 = arith.constant 0 : i32
    %c0_i32_0 = arith.constant 0 : i32
    %c0_i32_1 = arith.constant 0 : i32
    return %c0_i32, %c0_i32_0 : i32, i32
  }
  func.func @transform_4(%arg0: i32, %arg1: i32) -> (i32, i32) {
    %c0_i32 = arith.constant 0 : i32
    %c0_i32_0 = arith.constant 0 : i32
    %c0_i32_1 = arith.constant 0 : i32
    return %c0_i32, %c0_i32_0 : i32, i32
  }
  func.func @transform_5(%arg0: i32, %arg1: i32) -> (i32, i32) {
    %c0_i32 = arith.constant 0 : i32
    %c0_i32_0 = arith.constant 0 : i32
    %c0_i32_1 = arith.constant 0 : i32
    return %c0_i32, %c0_i32_0 : i32, i32
  }
  func.func @transform_6(%arg0: i32, %arg1: i32) -> (i32, i32) {
    %c0_i32 = arith.constant 0 : i32
    %c0_i32_0 = arith.constant 0 : i32
    %c0_i32_1 = arith.constant 0 : i32
    return %c0_i32, %c0_i32_0 : i32, i32
  }
  func.func @transform_7(%arg0: i32, %arg1: i32) -> (i32, i32, i32) {
    %c0_i32 = arith.constant 0 : i32
    %c0_i32_0 = arith.constant 0 : i32
    return %arg0, %c0_i32, %arg1 : i32, i32, i32
  }
}

</mosaic_0001>

<bundles_post_ra>
// kernel: tpu_custom_call.1
= control target key start
LH: loop header
LB: loop body
LE: loop exit
PB: predicated region body
PF: predicated region fallthrough
CT: control target
= control target key end

     0   :  { %12 = vsyncpa [#allocation3], 0  ;;  %s1259_s0 = inlined_call_operand.vmem [shape: f32[2,4,128], index: 0, kind: input, shape index: {}]   ;;  %s1260_s1 = inlined_call_operand.vmem [shape: f32[3,8,4], index: 1, kind: input, shape index: {}]   ;;  %s1261_s2 = inlined_call_operand.vmem [shape: f32[8,1], index: 2, kind: input, shape index: {}]   ;;  %s1262_s3 = inlined_call_operand.vmem [shape: f32[8,24], index: 3, kind: input, shape index: {}]   ;;  %s1263_s4 = inlined_call_operand.vmem [shape: f32[8,1], index: 4, kind: input, shape index: {}]   ;;  %s1264_s5 = inlined_call_operand.vmem [shape: f32[8,4], index: 5, kind: input, shape index: {}]   ;;  %s1265_s6 = inlined_call_operand.vmem [shape: f32[8,1], index: 6, kind: input, shape index: {}]   ;;  %s1266_s7 = inlined_call_operand.hbm [shape: f32[2,8,128], index: 7, kind: output, shape index: {}]  }
   0x1   :  { %14 = vsyncpa [#allocation3 + $0x1], 0  ;;  %s1089_s24 = smov 0   ;;  %s1091_s25 = smov 0  }
   0x2   :  { %s1093_s26 = smov 0   ;;  %s1095_s27 = smov 0  }
   0x3   :  { %s1097_s28 = smov 0   ;;  %s1099_s29 = smov 0  }
   0x4 LB: > { %s836_s30 = sadd.s32 4294967295, %s1039_s29   ;;  %s837_s8 = sadd.s32 4294967294, %s1039_s29   ;;  %s1039_s29 = sphi %s1099_s29, %s20_s29   ;;  %s1035_s28 = sphi %s1097_s28, %s1273_s28   ;;  %s1031_s27 = sphi %s1095_s27, %s1272_s27   ;;  %s1027_s26 = sphi %s1093_s26, %s1271_s26   ;;  %s1023_s25 = sphi %s1091_s25, %s1270_s25   ;;  %s1019_s24 = sphi %s1089_s24, %s1269_s24  }
   0x5   : > { %s32_s9 = sadd.s32 1, %s1035_s28  ;;  %s195_s10 = sadd.s32 1, %s1027_s26 }
   0x6   : > { %p34_p0 = scmp.ge.s32.totalorder %s32_s9, 2  ;;  %p205_p1 = scmp.ne.s32.totalorder %s1027_s26, %s1023_s25 }
   0x7   : > { %p206_p2 = scmp.eq.s32.totalorder %s836_s30, 1  ;;  %p211_p3 = scmp.ne.s32.totalorder %s1023_s25, %s1019_s24 }
   0x8   : > { %s1275_s9 = smov (%p34_p0, %s32_s9), 0  ;;  %p212_p5 = scmp.eq.s32.totalorder %s837_s8, 1 }
   0x9   : > { %p1129_p4 = por %p206_p2, %p205_p1  ;;  %s190_s12 = ssub.s32 %s1035_s28, %s1275_s9 }
   0xa   : > { %p840_p6 = scmp.ge.s32.totalorder %s1039_s29, 1  ;;  %p193_p7 = scmp.eq.s32.totalorder %s190_s12, 0 }
   0xb   : > { %p1136_p8 = por %p212_p5, %p211_p3  ;;  %p258_p9 = scmp.lt.s32.totalorder %s1039_s29, 3 }
   0xc   : > { %s1142_s14 = scalar_select %p193_p7, %s1027_s26, %s195_s10  }
   0xd   : > { %p259_p10 = pnand %p840_p6, %p258_p9 }
   0xe   : > { %s1042_s15 = smov (!%p259_p10), 4   ;;  %s1043_s16 = smov (!%p259_p10), 2  }
   0xf   : > { %262 = sbr.rel (%p259_p10) target bundleno = 798 (0x31e), region = 48  ;;  %p292_p11 = scmp.lt.s32.totalorder (!%p259_p10), %s1031_s27, 1 }
  0x10   : > { %s289_s12 = sand.u32 (!%p259_p10), 1, %s1023_s25   ;;  %s1048_s8 = smov (!%p259_p10), [#allocation2]  }
  0x11   : > { %s751_s23 = scalar_lea.sflag (!%p259_p10), [#allocation3], %s289_s12 }
  0x14   : > { %v1041_v0 = vmov 0.0   ;;  %s293_s17 = scalar_select %p292_p11, %s1031_s27, 1  ;;  %vm1044_vm0 = vmmov 0   ;;  %v1045_v1 = vmov 0   ;;  %v546_v3 = vld [vmem:[%s1261_s2] sm:$0xff]  ;;  %vm309_vm1 = vcmask 15360  }
  0x15   : > { %388 = vrot.lane.b32.xlu1 %v1041_v0, %s1042_s15  ;;  %305 = vrot.lane.b32.xlu0 %v1041_v0, %s1043_s16  ;;  %vm311_vm2 = vcmask 31744   ;;  %vm315_vm3 = vcmask 1043456   ;;  %v843_v8 = vld [vmem:[%s1260_s1 + $0x8] sm:$0xff]  ;;  %v300_v11 = vld [vmem:[%s1260_s1] sm:$0xff]  ;;  %vm559_vm4 = vcmask 1031168   ;;  %vm583_vm5 = vcmask 195584  }
  0x16   : > { %870 = vmatprep.subr.mxu0 %v1041_v0  ;;  %875 = vmatprep.subr.mxu1 %v1041_v0  ;;  %s842_s18 = sshll.u32 %s293_s17, 2  ;;  %v848_v12 = vld [vmem:[%s1260_s1 + $0x10] sm:$0xff]  ;;  %v658_v13 = vld [vmem:[%s1264_s5] sm:$0xff]  ;;  %v740_v41 = vlaneseq  ;;  %s855_s17 = sshll.u32 %s1031_s27, 7 }
  0x17   : > { %872 = vmatprep.mubr.msk.f32.mxu0 %vm1044_vm0, %v1041_v0  ;;  %877 = vmatprep.mubr.msk.f32.mxu1 %vm1044_vm0, %v1041_v0  ;;  %s298_s21 = scalar_lea.vmem %s1259_s0, %s842_s18  ;;  %s1046_s18 = smov 126   ;;  %v564_v31 = vld [vmem:[%s1263_s4] sm:$0xff] }
  0x18   : > { %961 = vset.pattern.permute.xlu0 %v1045_v1  ;;  %962 = vset.pattern.permute.xlu1 %v1045_v1  ;;  %v299_v2 = vld [vmem:[%s298_s21] sm:$0xf]  ;;  %s1047_s21 = smov 124   ;;  %v741_v46 = vand.u32 127, %v740_v41  ;;  %s1219_s22 = scalar_lea.hbm %s1266_s7, %s855_s17 }
  0x19   : > { %390 = vrot.lane.b32.xlu1 %v299_v2, %s1042_s15  ;;  %307 = vrot.lane.b32.xlu0 %v299_v2, %s1043_s16  ;;  %v659_v32 = vld [vmem:[%s1265_s6] sm:$0xff]  ;;  %s841_s16 = sshll.u32 %s289_s12, 3  ;;  %s967_s27 = sshll.u32 %s1048_s8, 4  ;;  %s968_s27 = int_to_ptr.vmem [resolvable:$false] %s967_s27 }
  0x1a   : > { %v563_v39 = vld [vmem:[%s1262_s3] sm:$0xff]  ;;  %vm745_vm6 = vcmp.lt.s32.totalorder %v741_v46, 16 }
  0x1d   : > { %549 = vperm.xlu0 %961, %v546_v3   ;;  %555 = vrot.lane.b32.xlu1 %v1041_v0, %s1046_s18 }
  0x87   : > { %v1162_v4 = vpop.permute.xlu1 %388  ;;  %v306_v5 = vpop.permute.xlu0 %305 }
  0x8b   : > { %v391_v6 = vpop.permute.xlu1 %390  ;;  %v308_v7 = vpop.permute.xlu0 %307 }
  0x8c   : > { %v310_v9 = vsel %vm309_vm1, %v306_v5, %v308_v7  ;;  %v392_v10 = vsel %vm311_vm2, %v1162_v4, %v391_v6 }
  0x8d   : > { %871 = vmatpush3.msk.msra.mxu0 %vm315_vm3, %v310_v9  ;;  %876 = vmatpush3.msk.msra.mxu1 %vm315_vm3, %v392_v10 }
  0x8e   : > { %873 = vmatmul.mubr.msk.f32.vlgmr.msra.gmra.mxu0 %vm311_vm2, %v843_v8  ;;  %880 = vmatprep.subr.mxu0 %v1041_v0 }
  0x8f   : > { %878 = vmatmul.mubr.msk.f32.vlgmr.msra.gmra.mxu1 %vm311_vm2, %v300_v11  ;;  %881 = vmatpush3.msk.msra.mxu0 %vm315_vm3, %v299_v2  ;;  %v556_v25 = vpop.permute.xlu1 %555 }
  0x90   : > { %882 = vmatprep.mubr.msk.f32.mxu0 %vm1044_vm0, %v1041_v0  ;;  %894 = vmatprep.subr.mxu0 %v1041_v0 }
  0x91   : > { %885 = vmatprep.subr.mxu1 %v1041_v0  ;;  %891 = vmatprep.mubr.msk.f32.mxu1 %vm1044_vm0, %v1041_v0 }
  0x92   : > { %883 = vmatmul.mubr.msk.f32.vlgmr.msra.gmra.mxu0 %vm311_vm2, %v848_v12 }
  0x93   : > { %895 = vmatpush3.msk.msra.mxu0 %vm315_vm3, %v299_v2  ;;  %896 = vmatprep.mubr.msk.f32.mxu0 %vm1044_vm0, %v1041_v0 }
  0x96   : > { %897 = vmatmul.mubr.msk.f32.vlgmr.msra.gmra.mxu0 %vm311_vm2, %v658_v13 }
  0x98   : > { %v550_v20 = vpop.permute.xlu0 %549 }
 0x14e   : > { %v384_v14 = vpop.f32.mrf.mxu0 }
 0x14f   : > { %v464_v15 = vpop.f32.mrf.mxu1 }
 0x150   : > { %v874_v16 = vpop.f32.mrf.mxu0  ;;  %v465_v17 = vadd.f32 %v464_v15, %v384_v14 }
 0x151   : > { %v879_v18 = vpop.f32.mrf.mxu1 }
 0x152   : > { %v541_v19 = vpop.f32.mrf.mxu0 }
 0x153   : > { %v545_v21 = vadd.f32 %v541_v19, %v465_v17 }
 0x154   : > { %v884_v22 = vpop.f32.mrf.mxu0 }
 0x155   : > { %v552_v23 = vadd.f32 %v550_v20, %v545_v21 }
 0x156   : > { %v734_v26 = vpop.f32.mrf.mxu0 }
 0x157   : > { %v553_v24 = vmax.f32 %v552_v23, 0.0 }
 0x158   : > { %v898_v27 = vpop.f32.mrf.mxu0 }
 0x159   : > { %561 = vrot.lane.b32.xlu0 %v553_v24, %s1047_s21  ;;  %557 = vrot.lane.b32.xlu1 %v553_v24, %s1046_s18  ;;  %s291_s18 = scalar_lea.vmem [#allocation2], %s841_s16 }
 0x15a   : > { %s765_s19 = sshll.u32 %s291_s18, 4  ;;  %s766_s19 = int_to_ptr.vmem [resolvable:$true] %s765_s19 }
 0x15b   : > { %s963_s30 = scalar_lea.vmem %s766_s19, 128  ;;  %p970_p1 = scmp.lt.s32.totalorder %s766_s19, %s968_s27 }
 0x15c   : > { %p964_p12 = scmp.ne.s32.totalorder %s766_s19, %s963_s30 }
 0x15e   : > { %p965_p13 = pnand %p964_p12, %p1129_p4 }
 0x160   : > { %p966_p0 = pneg %p965_p13 }
 0x1cb   : > { %v562_v28 = vpop.permute.xlu0 %561  ;;  %v558_v29 = vpop.permute.xlu1 %557 }
 0x1cc   : > { %576 = vrot.lane.b32.xlu1 %v562_v28, %s1042_s15  ;;  %v560_v30 = vsel %vm559_vm4, %v556_v25, %v558_v29 }
 0x1cd   : > { %572 = vrot.lane.b32.xlu0 %v560_v30, %s1042_s15 }
 0x1d0   : > { %574 = vrot.lane.b32.xlu1 %v558_v29, %s1042_s15 }
 0x1d1   : > { %570 = vrot.lane.b32.xlu0 %v553_v24, %s1042_s15  ;;  %s969_s15 = scalar_lea.vmem %s968_s27, 256 }
 0x1d2   : > { %p971_p2 = scmp.lt.s32.totalorder %s969_s15, %s963_s30 }
 0x1d4   : > { %567 = vperm.xlu1 %962, %v564_v31   ;;  %p972_p3 = por %p971_p2, %p970_p1 }
 0x1d5   : > { %662 = vperm.xlu0 %961, %v659_v32  }
 0x1d6   : > { %p973_p5 = pnand %p972_p3, %p966_p0 }
 0x23e   : > { %v577_v33 = vpop.permute.xlu1 %576 }
 0x23f   : > { %v573_v34 = vpop.permute.xlu0 %572  ;;  %886 = vmatpush3.msra.mxu1 %v577_v33 }
 0x240   : > { %887 = vmatprep.subr.mxu1 %v1041_v0 }
 0x242   : > { %v575_v35 = vpop.permute.xlu1 %574 }
 0x243   : > { %v579_v36 = vsel %vm311_vm2, %v573_v34, %v575_v35  ;;  %v571_v37 = vpop.permute.xlu0 %570 }
 0x244   : > { %v578_v38 = vsel %vm311_vm2, %v1162_v4, %v571_v37  ;;  %888 = vmatpush3.msra.mxu1 %v579_v36 }
 0x245   : > { %889 = vmatprep.subr.mxu1 %v1041_v0 }
 0x246   : > { %890 = vmatpush3.msra.mxu1 %v578_v38 }
 0x247   : > { %892 = vmatmul.mubr.msk.f32.vlgmr.msra.gmra.mxu1 %vm583_vm5, %v563_v39 }
 0x24f   : > { %v568_v40 = vpop.permute.xlu1 %567 }
 0x250   : > { %v663_v42 = vpop.permute.xlu0 %662 }
 0x251   : > { %v735_v47 = vadd.f32 %v734_v26, %v663_v42 }
 0x307   : > { %v653_v43 = vpop.f32.mrf.mxu1 }
 0x308   : > { %v654_v44 = vadd.f32 %v653_v43, %v568_v40 }
 0x309   : > { %v893_v45 = vpop.f32.mrf.mxu1 }
 0x30a   : > { %v657_v48 = vmax.f32 %v654_v44, 0.0 }
 0x30c   : > { %v738_v49 = vadd.f32 %v735_v47, %v657_v48 }
 0x30e   : > { %v739_v50 = vmax.f32 %v738_v49, 0.0 }
 0x310   : > { %v748_v51 = vsel %vm745_vm6, %v739_v50, 0.0 }
 0x311   : > { %749 = vst [vmem:[%s291_s18] sm:$0xff] %v748_v51 }
 0x312   : > { %976 = shalt.err (!%p973_p5)
}
 0x313   : > { %s977_s10 = scalar_lea.hbm %s1219_s22, 128  ;;  %s981_s17 = scalar_lea.hbm %s1266_s7, 256 }
 0x314   : > { %p978_p6 = scmp.ne.s32.totalorder %s1219_s22, %s977_s10  ;;  %p982_p10 = scmp.lt.s32.totalorder %s1219_s22, %s1266_s7 }
 0x315   : > { %p983_p11 = scmp.lt.s32.totalorder %s981_s17, %s977_s10 }
 0x316   : > { %p979_p7 = pnand %p978_p6, %p1129_p4 }
 0x317   : > { %p984_p12 = por %p983_p11, %p982_p10 }
 0x318   : > { %p980_p9 = pneg %p979_p7 }
 0x31a   : > { %p985_p13 = pnand %p984_p12, %p980_p9 }
 0x31c   : > { %988 = shalt.err (!%p985_p13)
}
 0x31d   : > { %899 = dma.vmem_to_hbm [thread:$0]  (%p1129_p4), %s766_s19, 128, %s1219_s22, %s751_s23  }
 0x31e PF: > { %p905_p0 = scmp.ge.s32.totalorder %s1039_s29, 2  ;;  %s777_s21 = sand.u32 1, %s1019_s24  }
 0x31f   : > { %s778_s30 = scalar_lea.sflag [#allocation3], %s777_s21 }
 0x320   : > { %p902_p1 = pnand %p905_p0, %p1136_p8 }
 0x322   : > { %p903_p2 = pneg %p902_p1 }
 0x324   : > { %1014 = dma.done.wait (%p903_p2), %s778_s30, 128  }
 0x325   : > { %1016 = vsyncadd (%p903_p2), %s778_s30, 4294967168  ;;  %s20_s29 = sadd.s32 1, %s1039_s29   ;;  %s1269_s24 = smov %s1023_s25 }
 0x326   : > { %p17_p3 = scmp.ge.s32.totalorder %s20_s29, 4   ;;  %s1270_s25 = smov %s1027_s26 }
 0x327   : > { %s1271_s26 = smov %s1142_s14  ;;  %s1272_s27 = smov %s1035_s28 }
 0x328   : > { %s1273_s28 = smov %s1275_s9  ;;  %19 = sbr.rel (!%p17_p3) target bundleno = 4 (0x4), region = 85 }
 0x32d   :  { %783 = vsyncpa [#allocation3], 1 }
 0x32e   :  { %785 = vsyncpa [#allocation3 + $0x1], 1 }

</bundles_post_ra>
